<compile_context>
chip_gen: v5e
topology: v5e:2x2
jax: 0.10.0
libtpu: 0.0.40
codegen_flags: <defaults>
</compile_context>

<pallas_src>
import functools

import jax
import jax.numpy as jnp
from jax.experimental import pallas as pl
from jax.experimental.pallas import tpu as pltpu

_LANES = 128
_SUBLANES = 8
_MAX_TILE_B = 8192          # per-grid-step rows: (8192,128) f32 tiles stay well under 32 MiB VMEM
_GRIDLESS_MAX_BATCH = 4096  # VMEM guard for the single-tile (grid-less) path
_TINY_BATCH = 16            # below this, never bother sharding across cores


def _round_up(x, m):
    return (x + m - 1) // m * m


def _num_tensorcores():
    """Best-effort TensorCore count of device 0 (2 on v7x, 1 on v5e/v6e)."""
    try:
        d = jax.devices()[0]
        n = getattr(d, "num_cores", None)
        if not n:
            n = 2 if "v7" in str(getattr(d, "device_kind", "")).lower() else 1
        return max(1, int(n))
    except Exception:
        return 1


def actor_kernel(x_ref, w1_ref, b1_ref, w2_ref, b2_ref, w3_ref, b3_ref, mu_ref):
    # All operands f32; MXU accumulates in f32 via preferred_element_type;
    # bias-add / ReLU on the VPU, tanh on the EUP.  All columns are lane-dense
    # (padded to 128), so no masked stores / partial vregs.
    h1 = jnp.dot(x_ref[...], w1_ref[...], preferred_element_type=jnp.float32)
    h1 = jnp.maximum(h1 + b1_ref[...], 0.0)
    h2 = jnp.dot(h1, w2_ref[...], preferred_element_type=jnp.float32)
    h2 = jnp.maximum(h2 + b2_ref[...], 0.0)
    mu = jnp.dot(h2, w3_ref[...], preferred_element_type=jnp.float32)
    mu_ref[...] = jnp.tanh(mu + b3_ref[...]).astype(mu_ref.dtype)


def prepare_actor_params(w1, b1, w2, b2, w3, b3):
    """One-time parameter prep (run OUTSIDE the per-step hot path).

    Inputs: nn.Linear params already transposed to (in_features, out_features)
    weights and (out_features,) or (1, out_features) biases (i.e. torch_w.T).
    Hidden widths and the action head are zero-padded up to multiples of 128
    so every vreg in the kernel is lane-dense; the padded columns stay exactly
    zero through the ReLUs and are sliced off the tanh head by the wrapper.

    Returns (params_tuple, n_actions).
    """
    f32 = jnp.float32
    w1 = jnp.asarray(w1, f32)
    w2 = jnp.asarray(w2, f32)
    w3 = jnp.asarray(w3, f32)
    b1 = jnp.asarray(b1, f32).reshape(1, -1)
    b2 = jnp.asarray(b2, f32).reshape(1, -1)
    b3 = jnp.asarray(b3, f32).reshape(1, -1)

    fc1 = w1.shape[1]
    fc2 = w2.shape[1]
    n_actions = w3.shape[1]
    f1p = _round_up(fc1, _LANES)
    f2p = _round_up(fc2, _LANES)
    nap = _round_up(n_actions, _LANES)

    w1p = jnp.pad(w1, ((0, 0), (0, f1p - fc1)))
    b1p = jnp.pad(b1, ((0, 0), (0, f1p - fc1)))
    w2p = jnp.pad(w2, ((0, f1p - fc1), (0, f2p - fc2)))
    b2p = jnp.pad(b2, ((0, 0), (0, f2p - fc2)))
    w3p = jnp.pad(w3, ((0, f2p - fc2), (0, nap - n_actions)))
    b3p = jnp.pad(b3, ((0, 0), (0, nap - n_actions)))
    return (w1p, b1p, w2p, b2p, w3p, b3p), n_actions


@functools.partial(jax.jit, static_argnames=("n_actions", "tile_b", "num_parallel"))
def actor_forward(state, params, *, n_actions, tile_b=None, num_parallel=None):
    """Fused 3-layer TD3 actor forward.

    state  : (batch, input_dims) f32
    params : output of prepare_actor_params (lane-padded, f32)
    Returns (batch, n_actions) f32.
    """
    w1p, b1p, w2p, b2p, w3p, b3p = params
    batch, input_dims = state.shape
    f1p = w1p.shape[1]
    f2p = w2p.shape[1]
    nap = w3p.shape[1]
    state = state.astype(jnp.float32)

    cost = pl.CostEstimate(
        flops=2 * batch * (input_dims * f1p + f1p * f2p + f2p * nap),
        transcendentals=batch * nap,
        bytes_accessed=4 * (state.size + w1p.size + b1p.size + w2p.size
                            + b2p.size + w3p.size + b3p.size + batch * nap),
    )
    args = (state, w1p, b1p, w2p, b2p, w3p, b3p)

    if num_parallel is None:
        num_parallel = _num_tensorcores()

    use_gridless = tile_b is None and (
        batch <= _TINY_BATCH
        or (num_parallel == 1 and batch <= _GRIDLESS_MAX_BATCH))

    if use_gridless:
        # Single-tile call: no grid => no per-step pipeline overhead.  Used
        # for online action selection and for medium batches on 1-TC chips.
        out = pl.pallas_call(
            actor_kernel,
            out_shape=jax.ShapeDtypeStruct((batch, nap), jnp.float32),
            in_specs=[pl.BlockSpec(memory_space=pltpu.MemorySpace.VMEM)] * 7,
            out_specs=pl.BlockSpec(memory_space=pltpu.MemorySpace.VMEM),
            compiler_params=pltpu.CompilerParams(vmem_limit_bytes=32 << 20),
            cost_estimate=cost,
        )(*args)
        return out[:, :n_actions]

    # --- Grid path: tile the batch axis only.  Weights/biases use constant
    # index_maps so they stay VMEM-resident across grid steps (DMA'd once);
    # the batch axis is "parallel" so v7x shards the steps across its two
    # TensorCores.  Step count is kept minimal (1 per core, unless VMEM
    # forces more for huge batches).
    if tile_b is None:
        steps = max(num_parallel, pl.cdiv(batch, _MAX_TILE_B))
        tile_b = _round_up(pl.cdiv(batch, steps), _SUBLANES)
    else:
        if tile_b <= 0 or tile_b % _SUBLANES:
            raise ValueError(
                f"tile_b must be a positive multiple of {_SUBLANES}, got {tile_b}")
        if tile_b > _MAX_TILE_B:
            raise ValueError(
                f"tile_b={tile_b} exceeds VMEM-safe maximum {_MAX_TILE_B}")
    steps = pl.cdiv(batch, tile_b)
    bp = steps * tile_b

    xs = state
    if bp != batch:
        # Padded rows produce tanh() of the pure-bias path (non-zero); they
        # are sliced off below, never read.
        xs = jnp.pad(state, ((0, bp - batch), (0, 0)))

    out = pl.pallas_call(
        actor_kernel,
        out_shape=jax.ShapeDtypeStruct((bp, nap), jnp.float32),
        grid=(steps,),
        in_specs=[
            pl.BlockSpec((tile_b, input_dims), lambda i: (i, 0)),   # state tile
            pl.BlockSpec((input_dims, f1p), lambda i: (0, 0)),      # w1 (pinned)
            pl.BlockSpec((1, f1p), lambda i: (0, 0)),               # b1 (pinned)
            pl.BlockSpec((f1p, f2p), lambda i: (0, 0)),             # w2 (pinned)
            pl.BlockSpec((1, f2p), lambda i: (0, 0)),               # b2 (pinned)
            pl.BlockSpec((f2p, nap), lambda i: (0, 0)),             # w3 (pinned)
            pl.BlockSpec((1, nap), lambda i: (0, 0)),               # b3 (pinned)
        ],
        out_specs=pl.BlockSpec((tile_b, nap), lambda i: (i, 0)),
        compiler_params=pltpu.CompilerParams(
            dimension_semantics=("parallel",),
            vmem_limit_bytes=32 << 20,
        ),
        cost_estimate=cost,
    )(xs, w1p, b1p, w2p, b2p, w3p, b3p)
    return out[:batch, :n_actions]


def init_linear(key, fan_in, fan_out):
    """PyTorch-style nn.Linear init: U(-1/sqrt(fan_in), 1/sqrt(fan_in)).
    Weight returned already transposed to (fan_in, fan_out); bias as (1, out)."""
    kw, kb = jax.random.split(key)
    bound = 1.0 / jnp.sqrt(float(fan_in))
    w = jax.random.uniform(kw, (fan_in, fan_out), jnp.float32, -bound, bound)
    b = jax.random.uniform(kb, (1, fan_out), jnp.float32, -bound, bound)
    return w, b


def _reference(state, w1, b1, w2, b2, w3, b3):
    h1 = jnp.maximum(state @ w1 + b1, 0.0)
    h2 = jnp.maximum(h1 @ w2 + b2, 0.0)
    return jnp.tanh(h2 @ w3 + b3)


if __name__ == "__main__":
    # Small shapes consistent with the module: input_dims=8, fc1=32, fc2=32,
    # n_actions=4.
    input_dims, fc1_dims, fc2_dims, n_actions = 8, 32, 32, 4

    key = jax.random.PRNGKey(0)
    k_s1, k_s2, k1, k2, k3 = jax.random.split(key, 5)

    w1, b1 = init_linear(k1, input_dims, fc1_dims)
    w2, b2 = init_linear(k2, fc1_dims, fc2_dims)
    w3, b3 = init_linear(k3, fc2_dims, n_actions)

    # One-time parameter prep (padding/casting hoisted out of the hot path).
    params, na = prepare_actor_params(w1, b1, w2, b2, w3, b3)

    # --- Path 1: tiny batch (online action selection) -> grid-less call.
    state_small = jax.random.normal(k_s1, (2, input_dims), jnp.float32)
    mu_small = jax.block_until_ready(
        actor_forward(state_small, params, n_actions=na))
    ref_small = _reference(state_small, w1, b1, w2, b2, w3, b3)
    assert mu_small.shape == (2, n_actions)
    assert jnp.allclose(mu_small, ref_small, atol=1e-5, rtol=1e-5)

    # --- Path 2: replay-sized batch, forced through the 2-way parallel grid
    # (what v7x would pick automatically).  batch=200 also exercises the
    # tile_b rounding (100 -> 104) and the jnp.pad batch padding.
    state_big = jax.random.normal(k_s2, (200, input_dims), jnp.float32)
    mu_big = jax.block_until_ready(
        actor_forward(state_big, params, n_actions=na, num_parallel=2))
    ref_big = _reference(state_big, w1, b1, w2, b2, w3, b3)
    assert mu_big.shape == (200, n_actions)
    assert jnp.allclose(mu_big, ref_big, atol=1e-5, rtol=1e-5)

    print("KERNEL_OK")
</pallas_src>

<mosaic_0001>
module attributes {stable_mosaic.version = 11 : i64} {
  func.func @actor_kernel(%arg0: memref<2x8xf32, #tpu.memory_space<vmem>>, %arg1: memref<8x128xf32, #tpu.memory_space<vmem>>, %arg2: memref<1x128xf32, #tpu.memory_space<vmem>>, %arg3: memref<128x128xf32, #tpu.memory_space<vmem>>, %arg4: memref<1x128xf32, #tpu.memory_space<vmem>>, %arg5: memref<128x128xf32, #tpu.memory_space<vmem>>, %arg6: memref<1x128xf32, #tpu.memory_space<vmem>>, %arg7: memref<2x128xf32, #tpu.memory_space<vmem>>) attributes {dimension_semantics = [], scalar_prefetch = 0 : i64, scratch_operands = 0 : i64, tpu.core_type = #tpu.core_type<tc>} {
    %c0 = arith.constant 0 : index
    %c0_0 = arith.constant 0 : index
    %0 = vector.load %arg0[%c0, %c0_0] : memref<2x8xf32, #tpu.memory_space<vmem>>, vector<2x8xf32>
    %c0_1 = arith.constant 0 : index
    %c0_2 = arith.constant 0 : index
    %1 = vector.load %arg1[%c0_1, %c0_2] : memref<8x128xf32, #tpu.memory_space<vmem>>, vector<8x128xf32>
    %cst = arith.constant dense<0.000000e+00> : vector<2x128xf32>
    %2 = tpu.matmul %0, %1, %cst {dimension_numbers = #tpu.dot_dimension_numbers<[1], [0], [0], [1], [0, 0, 1, 1], [], []>} : vector<2x8xf32>, vector<8x128xf32>, vector<2x128xf32> -> vector<2x128xf32>
    %c0_3 = arith.constant 0 : index
    %c0_4 = arith.constant 0 : index
    %3 = vector.load %arg2[%c0_3, %c0_4] : memref<1x128xf32, #tpu.memory_space<vmem>>, vector<1x128xf32>
    %4 = vector.broadcast %3 : vector<1x128xf32> to vector<2x128xf32>
    %5 = arith.addf %2, %4 : vector<2x128xf32>
    %cst_5 = arith.constant 0.000000e+00 : f32
    %6 = vector.broadcast %cst_5 : f32 to vector<2x128xf32>
    %7 = arith.maximumf %5, %6 : vector<2x128xf32>
    %c0_6 = arith.constant 0 : index
    %c0_7 = arith.constant 0 : index
    %8 = vector.load %arg3[%c0_6, %c0_7] : memref<128x128xf32, #tpu.memory_space<vmem>>, vector<128x128xf32>
    %cst_8 = arith.constant dense<0.000000e+00> : vector<2x128xf32>
    %9 = tpu.matmul %7, %8, %cst_8 {dimension_numbers = #tpu.dot_dimension_numbers<[1], [0], [0], [1], [0, 0, 1, 1], [], []>} : vector<2x128xf32>, vector<128x128xf32>, vector<2x128xf32> -> vector<2x128xf32>
    %c0_9 = arith.constant 0 : index
    %c0_10 = arith.constant 0 : index
    %10 = vector.load %arg4[%c0_9, %c0_10] : memref<1x128xf32, #tpu.memory_space<vmem>>, vector<1x128xf32>
    %11 = vector.broadcast %10 : vector<1x128xf32> to vector<2x128xf32>
    %12 = arith.addf %9, %11 : vector<2x128xf32>
    %cst_11 = arith.constant 0.000000e+00 : f32
    %13 = vector.broadcast %cst_11 : f32 to vector<2x128xf32>
    %14 = arith.maximumf %12, %13 : vector<2x128xf32>
    %c0_12 = arith.constant 0 : index
    %c0_13 = arith.constant 0 : index
    %15 = vector.load %arg5[%c0_12, %c0_13] : memref<128x128xf32, #tpu.memory_space<vmem>>, vector<128x128xf32>
    %cst_14 = arith.constant dense<0.000000e+00> : vector<2x128xf32>
    %16 = tpu.matmul %14, %15, %cst_14 {dimension_numbers = #tpu.dot_dimension_numbers<[1], [0], [0], [1], [0, 0, 1, 1], [], []>} : vector<2x128xf32>, vector<128x128xf32>, vector<2x128xf32> -> vector<2x128xf32>
    %c0_15 = arith.constant 0 : index
    %c0_16 = arith.constant 0 : index
    %17 = vector.load %arg6[%c0_15, %c0_16] : memref<1x128xf32, #tpu.memory_space<vmem>>, vector<1x128xf32>
    %18 = vector.broadcast %17 : vector<1x128xf32> to vector<2x128xf32>
    %19 = arith.addf %16, %18 : vector<2x128xf32>
    %20 = math.tanh %19 : vector<2x128xf32>
    %c0_17 = arith.constant 0 : index
    %c0_18 = arith.constant 0 : index
    %21 = vector.load %arg7[%c0_17, %c0_18] : memref<2x128xf32, #tpu.memory_space<vmem>>, vector<2x128xf32>
    tpu.vector_store %arg7[%c0_17, %c0_18], %20 {strides = array<i32>} : memref<2x128xf32, #tpu.memory_space<vmem>>, vector<2x128xf32>,
    return
  }
}

</mosaic_0001>

<bundles_post_ra>
// kernel: actor_forward.1
= control target key start
LH: loop header
LB: loop body
LE: loop exit
PB: predicated region body
PF: predicated region fallthrough
CT: control target
= control target key end

     0   :  { %12 = vsyncpa [#allocation3], 0  ;;  %s431_s0 = inlined_call_operand.hbm [shape: f32[2,8], index: 0, kind: input, shape index: {}]   ;;  %s432_s1 = inlined_call_operand.hbm [shape: f32[8,128], index: 1, kind: input, shape index: {}]   ;;  %s433_s2 = inlined_call_operand.vmem [shape: f32[1,128], index: 2, kind: input, shape index: {}]   ;;  %s434_s3 = inlined_call_operand.hbm [shape: f32[128,128], index: 3, kind: input, shape index: {}]   ;;  %s435_s4 = inlined_call_operand.vmem [shape: f32[1,128], index: 4, kind: input, shape index: {}]   ;;  %s436_s5 = inlined_call_operand.hbm [shape: f32[128,128], index: 5, kind: input, shape index: {}]   ;;  %s437_s6 = inlined_call_operand.vmem [shape: f32[1,128], index: 6, kind: input, shape index: {}]   ;;  %s438_s7 = inlined_call_operand.hbm [shape: f32[2,128], index: 7, kind: output, shape index: {}]  }
   0x1   :  { %13 = vsyncpa [#allocation6], 0 }
   0x2   :  { %14 = vsyncpa [#allocation9], 0  ;;  %s32_s26 = sshll.u32 %s432_s1, 4  ;;  %s33_s26 = int_to_ptr.hbm [resolvable:$true] %s32_s26 }
   0x3   :  { %15 = vsyncpa [#allocation4], 0  ;;  %s360_s27 = smov [#allocation5]   ;;  %s21_s8 = sshll.u32 %s431_s0, 4  ;;  %s22_s8 = int_to_ptr.hbm [resolvable:$true] %s21_s8 }
   0x4   :  { %s34_s28 = sshll.u32 %s360_s27, 4  ;;  %s361_s9 = smov [#allocation2]   ;;  %s35_s28 = int_to_ptr.vmem [resolvable:$true] %s34_s28 }
   0x5   :  { %37 = dma.hbm_to_vmem [thread:$0]  %s33_s26, 128, %s35_s28, [#allocation6]  }
   0x6   :  { %s23_s10 = sshll.u32 %s361_s9, 4  ;;  %s44_s13 = sshll.u32 %s434_s3, 4  ;;  %s24_s10 = int_to_ptr.vmem [resolvable:$true] %s23_s10  ;;  %s45_s13 = int_to_ptr.hbm [resolvable:$true] %s44_s13 }
   0x7   :  { %26 = dma.hbm_to_vmem [thread:$0]  %s22_s8, 32, %s24_s10, [#allocation3]  }
   0x8   :  { %s362_s1 = smov [#allocation7]   ;;  %s59_s17 = sshll.u32 %s436_s5, 4  ;;  %s60_s17 = int_to_ptr.hbm [resolvable:$true] %s59_s17 }
   0x9   :  { %s46_s14 = sshll.u32 %s362_s1, 4  ;;  %s363_s18 = smov 128   ;;  %s47_s14 = int_to_ptr.vmem [resolvable:$true] %s46_s14 }
   0xa   :  { %s364_s0 = smov 8   ;;  %s365_s19 = smov [#allocation8]  }
   0xb   :  { %52 = dma.hbm_to_vmem [thread:$0]  %s45_s13, 2048, %s47_s14, [#allocation6], %s363_s18, %s363_s18, %s364_s0  }
   0xc   :  { %s61_s20 = sshll.u32 %s365_s19, 4  ;;  %s62_s20 = int_to_ptr.vmem [resolvable:$true] %s61_s20 }
   0xd   :  { %67 = dma.hbm_to_vmem [thread:$0]  %s60_s17, 2048, %s62_s20, [#allocation9], %s363_s18, %s363_s18, %s364_s0  }
   0xe   :  { %352 = dma.done.wait [#allocation3], 32  }
   0xf   :  { %353 = vsyncadd [#allocation3], 4294967264 }
  0x10   :  { %354 = dma.done.wait [#allocation6], 2176  }
  0x11   :  { %355 = vsyncadd [#allocation6], 4294965120 }
  0x12   :  { %356 = dma.done.wait [#allocation9], 2048  }
  0x13   :  { %357 = vsyncadd [#allocation9], 4294965248  ;;  %vm92_vm0 = vcmask 64512   ;;  %v87_v0 = vld [vmem:[#allocation5] sm:$0xff]  ;;  %v86_v1 = vld [vmem:[#allocation2] sm:$0x3] }
  0x14   :  { %v132_v2 = vld [vmem:[#allocation7 + $0x78] sm:$0xff]  ;;  %111 = vmatpush.msra.mxu0 %v87_v0  ;;  %v131_v3 = vld [vmem:[#allocation7 + $0x70] sm:$0xff]  ;;  %v130_v4 = vld [vmem:[#allocation7 + $0x68] sm:$0xff]  ;;  %s366_s24 = smov [#allocation10]   ;;  %s207_s28 = sshll.u32 %s438_s7, 4  ;;  %s208_s28 = int_to_ptr.hbm [resolvable:$true] %s207_s28 }
  0x15   :  { %137 = vmatpush.msra.mxu1 %v132_v2  ;;  %219 = vmatmul.msk.f32.vlgmr.msra.gmra.mxu0 %vm92_vm0, %v86_v1  ;;  %v129_v5 = vld [vmem:[#allocation7 + $0x60] sm:$0xff]  ;;  %v128_v6 = vld [vmem:[#allocation7 + $0x58] sm:$0xff]  ;;  %v127_v7 = vld [vmem:[#allocation7 + $0x50] sm:$0xff]  ;;  %s205_s25 = sshll.u32 %s366_s24, 4  ;;  %s206_s25 = int_to_ptr.vmem [resolvable:$true] %s205_s25 }
  0x16   :  { %v126_v8 = vld [vmem:[#allocation7 + $0x48] sm:$0xff]  ;;  %v125_v9 = vld [vmem:[#allocation7 + $0x40] sm:$0xff]  ;;  %v124_v10 = vld [vmem:[#allocation7 + $0x38] sm:$0xff] }
  0x17   :  { %138 = vmatpush.msra.mxu1 %v131_v3  ;;  %v123_v11 = vld [vmem:[#allocation7 + $0x30] sm:$0xff]  ;;  %v122_v12 = vld [vmem:[#allocation7 + $0x28] sm:$0xff]  ;;  %v121_v13 = vld [vmem:[#allocation7 + $0x20] sm:$0xff] }
  0x18   :  { %v120_v14 = vld [vmem:[#allocation7 + $0x18] sm:$0xff]  ;;  %v119_v15 = vld [vmem:[#allocation7 + $0x10] sm:$0xff]  ;;  %v118_v16 = vld [vmem:[#allocation7 + $0x8] sm:$0xff] }
  0x19   :  { %139 = vmatpush.msra.mxu1 %v130_v4  ;;  %v117_v17 = vld [vmem:[#allocation7] sm:$0xff]  ;;  %v173_v18 = vld [vmem:[#allocation8 + $0x78] sm:$0xff]  ;;  %v172_v19 = vld [vmem:[#allocation8 + $0x70] sm:$0xff] }
  0x1a   :  { %178 = vmatpush.msra.mxu2 %v173_v18  ;;  %v171_v20 = vld [vmem:[#allocation8 + $0x68] sm:$0xff]  ;;  %v170_v21 = vld [vmem:[#allocation8 + $0x60] sm:$0xff]  ;;  %v169_v22 = vld [vmem:[#allocation8 + $0x58] sm:$0xff] }
  0x1b   :  { %140 = vmatpush.msra.mxu1 %v129_v5  ;;  %v168_v23 = vld [vmem:[#allocation8 + $0x50] sm:$0xff]  ;;  %v167_v24 = vld [vmem:[#allocation8 + $0x48] sm:$0xff]  ;;  %v166_v25 = vld [vmem:[#allocation8 + $0x40] sm:$0xff] }
  0x1c   :  { %179 = vmatpush.msra.mxu2 %v172_v19  ;;  %v165_v26 = vld [vmem:[#allocation8 + $0x38] sm:$0xff]  ;;  %v164_v27 = vld [vmem:[#allocation8 + $0x30] sm:$0xff]  ;;  %v163_v28 = vld [vmem:[#allocation8 + $0x28] sm:$0xff] }
  0x1d   :  { %141 = vmatpush.msra.mxu1 %v128_v6  ;;  %v162_v29 = vld [vmem:[#allocation8 + $0x20] sm:$0xff]  ;;  %v161_v30 = vld [vmem:[#allocation8 + $0x18] sm:$0xff]  ;;  %v227_v31 = vld [vmem:[%s433_s2] ss:$0 sm:$0xff] }
  0x1e   :  { %180 = vmatpush.msra.mxu2 %v171_v20  ;;  %v160_v35 = vld [vmem:[#allocation8 + $0x10] sm:$0xff]  ;;  %v159_v36 = vld [vmem:[#allocation8 + $0x8] sm:$0xff]  ;;  %v158_v37 = vld [vmem:[#allocation8] sm:$0xff] }
  0x1f   :  { %142 = vmatpush.msra.mxu1 %v127_v7  ;;  %v228_v38 = vld [vmem:[%s435_s4] ss:$0 sm:$0xff] }
  0x20   :  { %181 = vmatpush.msra.mxu2 %v170_v21  ;;  %v229_v42 = vld [vmem:[%s437_s6] ss:$0 sm:$0xff] }
  0x21   :  { %143 = vmatpush.msra.mxu1 %v126_v8 }
  0x22   :  { %182 = vmatpush.msra.mxu2 %v169_v22 }
  0x23   :  { %144 = vmatpush.msra.mxu1 %v125_v9 }
  0x24   :  { %183 = vmatpush.msra.mxu2 %v168_v23 }
  0x25   :  { %145 = vmatpush.msra.mxu1 %v124_v10 }
  0x26   :  { %184 = vmatpush.msra.mxu2 %v167_v24 }
  0x27   :  { %146 = vmatpush.msra.mxu1 %v123_v11 }
  0x28   :  { %185 = vmatpush.msra.mxu2 %v166_v25 }
  0x29   :  { %147 = vmatpush.msra.mxu1 %v122_v12 }
  0x2a   :  { %186 = vmatpush.msra.mxu2 %v165_v26 }
  0x2b   :  { %148 = vmatpush.msra.mxu1 %v121_v13 }
  0x2c   :  { %187 = vmatpush.msra.mxu2 %v164_v27 }
  0x2d   :  { %149 = vmatpush.msra.mxu1 %v120_v14 }
  0x2e   :  { %188 = vmatpush.msra.mxu2 %v163_v28 }
  0x2f   :  { %150 = vmatpush.msra.mxu1 %v119_v15 }
  0x30   :  { %189 = vmatpush.msra.mxu2 %v162_v29 }
  0x31   :  { %151 = vmatpush.msra.mxu1 %v118_v16 }
  0x32   :  { %190 = vmatpush.msra.mxu2 %v161_v30 }
  0x33   :  { %152 = vmatpush.msra.mxu1 %v117_v17 }
  0x34   :  { %191 = vmatpush.msra.mxu2 %v160_v35 }
  0x36   :  { %192 = vmatpush.msra.mxu2 %v159_v36 }
  0x38   :  { %193 = vmatpush.msra.mxu2 %v158_v37 }
  0x92   :  { %v113_v32 = vpop.f32.mrf.mxu0 }
  0x93   :  { %v114_v33 = vadd.f32 %v227_v31, %v113_v32 }
  0x95   :  { %v116_v34 = vmax.f32 %v114_v33, 0.0 }
  0x97   :  { %153 = vmatmul.f32.vlgmr.msra.gmra.mxu1 %v116_v34 }
 0x114   :  { %v154_v39 = vpop.f32.mrf.mxu1 }
 0x115   :  { %v155_v40 = vadd.f32 %v228_v38, %v154_v39 }
 0x117   :  { %v157_v41 = vmax.f32 %v155_v40, 0.0 }
 0x119   :  { %194 = vmatmul.f32.vlgmr.msra.gmra.mxu2 %v157_v41 }
 0x19c   :  { %v195_v43 = vpop.f32.mrf.mxu2 }
 0x19d   :  { %v196_v44 = vadd.f32 %v229_v42, %v195_v43 }
 0x19f   :  { %230 = vtanh.f32 %v196_v44 }
 0x1a5   :  { %v231_v45 = vpop.eup %230 }
 0x1a6   :  { %199 = vst [vmem:[#allocation10] sm:$0x3] %v231_v45 }
 0x1a7   :  { %210 = dma.vmem_to_hbm [thread:$0]  %s206_s25, 32, %s208_s28, [#allocation4]  }
 0x1a8   :  { %358 = dma.done.wait [#allocation4], 32  }
 0x1a9   :  { %359 = vsyncadd [#allocation4], 4294967264 }
 0x1aa   :  { %215 = vsyncpa [#allocation3], 1 }
 0x1ab   :  { %216 = vsyncpa [#allocation6], 1 }
 0x1ac   :  { %217 = vsyncpa [#allocation9], 1 }
 0x1ad   :  { %218 = vsyncpa [#allocation4], 1 }

</bundles_post_ra>
